<compile_context>
chip_gen: v7x
topology: tpu7x:2x2x1
jax: 0.10.0
libtpu: 0.0.40
codegen_flags: <defaults>
</compile_context>

<pallas_src>
import jax
import jax.numpy as jnp
from jax import lax
from jax.experimental import pallas as pl
from jax.experimental.pallas import tpu as pltpu

LANE = 128  # TPU lane width


def _mlp_ref(x2d, w1, b1, w2, b2):
    """Pure-JAX reference / small-batch fast path (PyTorch forward semantics)."""
    h = jnp.maximum(x2d @ w1.T + b1, 0.0)
    return jnp.maximum(h @ w2.T + b2, 0.0)


def mlp_kernel(p_ref, x_ref, o_ref):
    """p_ref: (12,) f32 SMEM = [w1 (row-major 4), b1 (2), w2 (4), b2 (2)]
    x_ref / o_ref: (TR, 128) f32 VMEM blocks of the flat interleaved stream:
      even lane = feature 0 of a sample, adjacent odd lane = feature 1 of the same sample."""
    x = x_ref[...]                                        # (TR, 128), interleaved features
    lane = lax.broadcasted_iota(jnp.int32, x.shape, 1)
    even = (lane & 1) == 0                                # True on feature-0 lanes

    # Partner lane = the other feature of the same sample (adjacent lane).
    # roll(x, 127) gives lane l -> x[l+1]; roll(x, 1) gives lane l -> x[l-1].  Pairs never
    # straddle a 128-lane row, so the wrap-around lanes are never selected.
    x_p = jnp.where(even, pltpu.roll(x, 127, axis=1), pltpu.roll(x, 1, axis=1))

    # Scalar parameter reads from SMEM (sld) -> VPU splats.  No MXU for a 2x2 contraction.
    w1_00, w1_01, w1_10, w1_11 = p_ref[0], p_ref[1], p_ref[2], p_ref[3]
    b1_0, b1_1 = p_ref[4], p_ref[5]
    w2_00, w2_01, w2_10, w2_11 = p_ref[6], p_ref[7], p_ref[8], p_ref[9]
    b2_0, b2_1 = p_ref[10], p_ref[11]

    # Layer 1: on even lanes compute h0, on odd lanes compute h1 (output stays interleaved).
    a1 = jnp.where(even, w1_00, w1_11)    # coefficient of the "self" feature
    c1 = jnp.where(even, w1_01, w1_10)    # coefficient of the "partner" feature
    d1 = jnp.where(even, b1_0, b1_1)
    h = jnp.maximum(x * a1 + x_p * c1 + d1, 0.0)

    # Layer 2, same trick on h.
    h_p = jnp.where(even, pltpu.roll(h, 127, axis=1), pltpu.roll(h, 1, axis=1))
    a2 = jnp.where(even, w2_00, w2_11)
    c2 = jnp.where(even, w2_01, w2_10)
    d2 = jnp.where(even, b2_0, b2_1)
    o_ref[...] = jnp.maximum(h * a2 + h_p * c2 + d2, 0.0)


def neural_network_forward(x, w1, b1, w2, b2, *, block_rows=1024, force_kernel=False):
    """x: (B, ...) flattened to (B, 2).  w1, w2: (out=2, in=2) PyTorch layout; b1, b2: (2,).
    Returns (B, 2) f32, identical to the PyTorch module's forward."""
    B = x.shape[0]
    x2d = x.reshape(B, -1).astype(jnp.float32)            # nn.Flatten()
    assert x2d.shape[1] == 2, "Linear expects 2 input features"
    w1 = w1.astype(jnp.float32); b1 = b1.astype(jnp.float32)
    w2 = w2.astype(jnp.float32); b2 = b2.astype(jnp.float32)

    N = 2 * B                                             # flat interleaved element count
    R = pl.cdiv(N, LANE)                                  # 128-lane rows needed

    # Small-batch fast path: custom-call launch + step overhead dominates; XLA fusion wins.
    if R < 16 and not force_kernel:
        return _mlp_ref(x2d, w1, b1, w2, b2)

    block_rows = max(8, (block_rows // 8) * 8)            # multiple of 8 sublanes
    if R < 16:
        TR = max(8, ((R + 7) // 8) * 8)                   # single block, sublane-aligned
        G = 1
    else:
        # Force G >= 2 (megacore on v7x) and cap the tile at block_rows.
        TR = min(block_rows, ((pl.cdiv(R, 2) + 7) // 8) * 8)
        G = pl.cdiv(R, TR)

    P = G * TR * LANE                                     # padded flat length
    flat = x2d.reshape(-1)                                # row-major (B,2) -> interleaved
    if P != N:
        flat = jnp.pad(flat, (0, P - N))
    xv = flat.reshape(G * TR, LANE)

    # One packed parameter vector (row-major w1, b1, w2, b2) -> SMEM, resident.
    params = jnp.concatenate(
        [w1.reshape(-1), b1.reshape(-1), w2.reshape(-1), b2.reshape(-1)])

    out = pl.pallas_call(
        mlp_kernel,
        out_shape=jax.ShapeDtypeStruct((G * TR, LANE), jnp.float32),
        grid=(G,),
        in_specs=[
            pl.BlockSpec(memory_space=pltpu.MemorySpace.SMEM),   # 12 scalars, resident
            pl.BlockSpec((TR, LANE), lambda i: (i, 0)),          # batch tile
        ],
        out_specs=pl.BlockSpec((TR, LANE), lambda i: (i, 0)),
        compiler_params=pltpu.CompilerParams(
            dimension_semantics=("parallel",)),           # shard batch across TCs (v7x)
        cost_estimate=pl.CostEstimate(
            flops=20 * P,                                 # FMAs + selects + relus, roughly
            transcendentals=0,
            bytes_accessed=2 * P * 4),                    # read + write, f32
    )(params, xv)

    # Output is interleaved exactly like the input: just undo pad and view as (B, 2).
    return out.reshape(-1)[:N].reshape(B, 2)


def init_params(key):
    # Deterministic init mimicking nn.Linear's U(-1/sqrt(in), 1/sqrt(in)), in=2.
    k1, k2, k3, k4 = jax.random.split(key, 4)
    bound = 1.0 / jnp.sqrt(2.0)
    w1 = jax.random.uniform(k1, (2, 2), jnp.float32, -bound, bound)  # (out, in)
    b1 = jax.random.uniform(k2, (2,), jnp.float32, -bound, bound)
    w2 = jax.random.uniform(k3, (2, 2), jnp.float32, -bound, bound)
    b2 = jax.random.uniform(k4, (2,), jnp.float32, -bound, bound)
    return w1, b1, w2, b2


if __name__ == "__main__":
    key = jax.random.PRNGKey(0)
    kx, kp = jax.random.split(key)
    w1, b1, w2, b2 = init_params(kp)

    # Small deterministic checks: (8,1,2) exercises nn.Flatten + padding; (300,2) exercises
    # a partial block; (2048,2) exercises the multi-block "parallel" grid path.
    for shape in [(8, 1, 2), (300, 2), (2048, 2)]:
        x = jax.random.normal(jax.random.fold_in(kx, shape[0]), shape, jnp.float32)
        out = jax.block_until_ready(
            neural_network_forward(x, w1, b1, w2, b2, force_kernel=True))
        ref = _mlp_ref(x.reshape(shape[0], -1), w1, b1, w2, b2)
        assert out.shape == ref.shape, f"shape mismatch vs reference for {shape}"
        assert jnp.allclose(out, ref, atol=1e-5, rtol=1e-5), f"mismatch vs reference for {shape}"

    print("KERNEL_OK")
</pallas_src>

<mosaic_0001>
module attributes {stable_mosaic.version = 11 : i64} {
  func.func @mlp_kernel(%arg0: i32, %arg1: memref<12xf32, #tpu.memory_space<smem>>, %arg2: memref<8x128xf32, #tpu.memory_space<vmem>>, %arg3: memref<8x128xf32, #tpu.memory_space<vmem>>) attributes {dimension_semantics = [#tpu.dimension_semantics<parallel>], iteration_bounds = array<i64: 1>, scalar_prefetch = 0 : i64, scratch_operands = 0 : i64, tpu.core_type = #tpu.core_type<tc>, window_params = [{transform_indices = @transform_0, window_bounds = array<i64: 12>}, {transform_indices = @transform_1, window_bounds = array<i64: 8, 128>}, {transform_indices = @transform_2, window_bounds = array<i64: 8, 128>}]} {
    %c0 = arith.constant 0 : index
    %c0_0 = arith.constant 0 : index
    %0 = vector.load %arg2[%c0, %c0_0] : memref<8x128xf32, #tpu.memory_space<vmem>>, vector<8x128xf32>
    %1 = tpu.iota {dimensions = array<i32: 1>} : vector<8x128xi32>
    %c1_i32 = arith.constant 1 : i32
    %2 = vector.broadcast %c1_i32 : i32 to vector<8x128xi32>
    %3 = arith.andi %1, %2 : vector<8x128xi32>
    %c0_i32 = arith.constant 0 : i32
    %4 = vector.broadcast %c0_i32 : i32 to vector<8x128xi32>
    %5 = arith.cmpi eq, %3, %4 : vector<8x128xi32>
    %c127_i32 = arith.constant 127 : i32
    %6 = tpu.dynamic_rotate %0 by %c127_i32 dim 1 : vector<8x128xf32>, i32 -> vector<8x128xf32>
    %c1_i32_1 = arith.constant 1 : i32
    %7 = tpu.dynamic_rotate %0 by %c1_i32_1 dim 1 : vector<8x128xf32>, i32 -> vector<8x128xf32>
    %8 = arith.select %5, %6, %7 : vector<8x128xi1>, vector<8x128xf32>
    %c0_2 = arith.constant 0 : index
    %9 = memref.load %arg1[%c0_2] : memref<12xf32, #tpu.memory_space<smem>>
    %c1 = arith.constant 1 : index
    %10 = memref.load %arg1[%c1] : memref<12xf32, #tpu.memory_space<smem>>
    %c2 = arith.constant 2 : index
    %11 = memref.load %arg1[%c2] : memref<12xf32, #tpu.memory_space<smem>>
    %c3 = arith.constant 3 : index
    %12 = memref.load %arg1[%c3] : memref<12xf32, #tpu.memory_space<smem>>
    %c4 = arith.constant 4 : index
    %13 = memref.load %arg1[%c4] : memref<12xf32, #tpu.memory_space<smem>>
    %c5 = arith.constant 5 : index
    %14 = memref.load %arg1[%c5] : memref<12xf32, #tpu.memory_space<smem>>
    %c6 = arith.constant 6 : index
    %15 = memref.load %arg1[%c6] : memref<12xf32, #tpu.memory_space<smem>>
    %c7 = arith.constant 7 : index
    %16 = memref.load %arg1[%c7] : memref<12xf32, #tpu.memory_space<smem>>
    %c8 = arith.constant 8 : index
    %17 = memref.load %arg1[%c8] : memref<12xf32, #tpu.memory_space<smem>>
    %c9 = arith.constant 9 : index
    %18 = memref.load %arg1[%c9] : memref<12xf32, #tpu.memory_space<smem>>
    %c10 = arith.constant 10 : index
    %19 = memref.load %arg1[%c10] : memref<12xf32, #tpu.memory_space<smem>>
    %c11 = arith.constant 11 : index
    %20 = memref.load %arg1[%c11] : memref<12xf32, #tpu.memory_space<smem>>
    %21 = vector.broadcast %9 : f32 to vector<8x128xf32>
    %22 = vector.broadcast %12 : f32 to vector<8x128xf32>
    %23 = arith.select %5, %21, %22 : vector<8x128xi1>, vector<8x128xf32>
    %24 = vector.broadcast %10 : f32 to vector<8x128xf32>
    %25 = vector.broadcast %11 : f32 to vector<8x128xf32>
    %26 = arith.select %5, %24, %25 : vector<8x128xi1>, vector<8x128xf32>
    %27 = vector.broadcast %13 : f32 to vector<8x128xf32>
    %28 = vector.broadcast %14 : f32 to vector<8x128xf32>
    %29 = arith.select %5, %27, %28 : vector<8x128xi1>, vector<8x128xf32>
    %30 = arith.mulf %0, %23 : vector<8x128xf32>
    %31 = arith.mulf %8, %26 : vector<8x128xf32>
    %32 = arith.addf %30, %31 : vector<8x128xf32>
    %33 = arith.addf %32, %29 : vector<8x128xf32>
    %cst = arith.constant 0.000000e+00 : f32
    %34 = vector.broadcast %cst : f32 to vector<8x128xf32>
    %35 = arith.maximumf %33, %34 : vector<8x128xf32>
    %c127_i32_3 = arith.constant 127 : i32
    %36 = tpu.dynamic_rotate %35 by %c127_i32_3 dim 1 : vector<8x128xf32>, i32 -> vector<8x128xf32>
    %c1_i32_4 = arith.constant 1 : i32
    %37 = tpu.dynamic_rotate %35 by %c1_i32_4 dim 1 : vector<8x128xf32>, i32 -> vector<8x128xf32>
    %38 = arith.select %5, %36, %37 : vector<8x128xi1>, vector<8x128xf32>
    %39 = vector.broadcast %15 : f32 to vector<8x128xf32>
    %40 = vector.broadcast %18 : f32 to vector<8x128xf32>
    %41 = arith.select %5, %39, %40 : vector<8x128xi1>, vector<8x128xf32>
    %42 = vector.broadcast %16 : f32 to vector<8x128xf32>
    %43 = vector.broadcast %17 : f32 to vector<8x128xf32>
    %44 = arith.select %5, %42, %43 : vector<8x128xi1>, vector<8x128xf32>
    %45 = vector.broadcast %19 : f32 to vector<8x128xf32>
    %46 = vector.broadcast %20 : f32 to vector<8x128xf32>
    %47 = arith.select %5, %45, %46 : vector<8x128xi1>, vector<8x128xf32>
    %48 = arith.mulf %35, %41 : vector<8x128xf32>
    %49 = arith.mulf %38, %44 : vector<8x128xf32>
    %50 = arith.addf %48, %49 : vector<8x128xf32>
    %51 = arith.addf %50, %47 : vector<8x128xf32>
    %cst_5 = arith.constant 0.000000e+00 : f32
    %52 = vector.broadcast %cst_5 : f32 to vector<8x128xf32>
    %53 = arith.maximumf %51, %52 : vector<8x128xf32>
    %c0_6 = arith.constant 0 : index
    %c0_7 = arith.constant 0 : index
    %54 = vector.load %arg3[%c0_6, %c0_7] : memref<8x128xf32, #tpu.memory_space<vmem>>, vector<8x128xf32>
    tpu.vector_store %arg3[%c0_6, %c0_7], %53 {strides = array<i32>} : memref<8x128xf32, #tpu.memory_space<vmem>>, vector<8x128xf32>,
    return
  }
  func.func @transform_0(%arg0: i32) -> i32 {
    %c0_i32 = arith.constant 0 : i32
    %c0_i32_0 = arith.constant 0 : i32
    return %c0_i32 : i32
  }
  func.func @transform_1(%arg0: i32) -> (i32, i32) {
    %c0_i32 = arith.constant 0 : i32
    %c0_i32_0 = arith.constant 0 : i32
    return %arg0, %c0_i32 : i32, i32
  }
  func.func @transform_2(%arg0: i32) -> (i32, i32) {
    %c0_i32 = arith.constant 0 : i32
    %c0_i32_0 = arith.constant 0 : i32
    return %arg0, %c0_i32 : i32, i32
  }
}

</mosaic_0001>

<bundles_post_ra>
// kernel: tpu_custom_call.1
= control target key start
LH: loop header
LB: loop body
LE: loop exit
PB: predicated region body
PF: predicated region fallthrough
CT: control target
= control target key end

     0   :  { %7 = vsyncpa [#allocation5], 0  ;;  %s263_s0 = inlined_call_operand.hbm [shape: f32[12], index: 0, kind: input, shape index: {}]   ;;  %s264_s1 = inlined_call_operand.hbm [shape: f32[8,128], index: 1, kind: input, shape index: {}]   ;;  %s265_s2 = inlined_call_operand.hbm [shape: f32[8,128], index: 2, kind: output, shape index: {}]  }
   0x1   :  { %8 = vsyncpa [#allocation3], 0 }
   0x2   :  { %9 = vsyncpa [#allocation4], 0  ;;  %s123_s11 = scalar_lea.hbm %s263_s0, 16 }
   0x3   :  { %p124_p0 = scmp.ne.s32.totalorder %s263_s0, %s123_s11  ;;  %p127_p1 = scmp.lt.u32.totalorder %s123_s11, %s263_s0 }
   0x5   :  { %p129_p2 = pnand %p127_p1, %p124_p0 }
   0x7   :  { %132 = shalt.err (!%p129_p2)
}
   0x8   :  { %s183_s16 = smov [#allocation2]   ;;  %s184_s19 = smov [#allocation6]  }
   0x9   :  { %17 = dma.hbm_to_smem %s263_s0, 16, %s183_s16, [#allocation5]  }
   0xa   :  { %s24_s20 = sshll.u32 %s184_s19, 4  ;;  %s133_s23 = scalar_lea.hbm %s264_s1, 128  ;;  %s25_s20 = int_to_ptr.vmem [resolvable:$true] %s24_s20 }
   0xb   :  { %p134_p3 = scmp.ne.s32.totalorder %s264_s1, %s133_s23  ;;  %p137_p4 = scmp.lt.u32.totalorder %s133_s23, %s264_s1 }
   0xd   :  { %p139_p5 = pnand %p137_p4, %p134_p3 }
   0xf   :  { %142 = shalt.err (!%p139_p5)
}
  0x10   :  { %s143_s28 = scalar_lea.vmem %s25_s20, 128  ;;  %p148_p7 = scmp.lt.s32.totalorder %s25_s20, %s25_s20 }
  0x11   :  { %p144_p6 = scmp.ne.s32.totalorder %s25_s20, %s143_s28  ;;  %p149_p8 = scmp.lt.s32.totalorder %s143_s28, %s143_s28 }
  0x13   :  { %p150_p9 = por %p149_p8, %p148_p7 }
  0x15   :  { %p151_p10 = pnand %p150_p9, %p144_p6 }
  0x17   :  { %154 = shalt.err (!%p151_p10)
}
  0x18   :  { %27 = dma.hbm_to_vmem [thread:$0]  %s264_s1, 128, %s25_s20, [#allocation3]  }
  0x19   :  { %177 = dma.done.wait [#allocation5], 16  }
  0x1a   :  { %178 = vsyncadd [#allocation5], 4294967280 }
  0x1b   :  { %179 = dma.done.wait [#allocation3], 128  }
  0x1c   :  { %180 = vsyncadd [#allocation3], 4294967168 }
  0x1d   :  { %34 = sfence }
  0x1e   :  { %v35_v0 = vld [vmem:[#allocation6] sm:$0xff]  ;;  %s185_s30 = smov 127   ;;  %s186_s3 = smov 1   ;;  %v36_v1 = vlaneseq }
  0x1f   :  { %40 = vrot.lane.b32.xlu0 %v35_v0, %s185_s30  ;;  %s45_s4 = sld [smem:[#allocation2]]  ;;  %s109_s5 = sld [smem:[#allocation2 + $0x3]] }
  0x20   :  { %v37_v2 = vand.u32 127, %v36_v1  ;;  %s107_s6 = sld [smem:[#allocation2 + $0x1]]  ;;  %s108_s7 = sld [smem:[#allocation2 + $0x2]] }
  0x21   :  { %s110_s1 = sld [smem:[#allocation2 + $0x4]]  ;;  %s111_s8 = sld [smem:[#allocation2 + $0x5]] }
  0x22   :  { %v38_v3 = vand.u32 1, %v37_v2  ;;  %s112_s9 = sld [smem:[#allocation2 + $0x6]]  ;;  %s115_s10 = sld [smem:[#allocation2 + $0x9]] }
  0x23   :  { %42 = vrot.lane.b32.xlu0 %v35_v0, %s186_s3  ;;  %s113_s11 = sld [smem:[#allocation2 + $0x7]]  ;;  %s114_s12 = sld [smem:[#allocation2 + $0x8]] }
  0x24   :  { %vm229_vm0 = vcmp.eq.s32.totalorder %v38_v3, 0  ;;  %s116_s13 = sld [smem:[#allocation2 + $0xa]]  ;;  %s117_s14 = sld [smem:[#allocation2 + $0xb]] }
  0x25   :  { %v57_v5 = vstv %s45_s4  ;;  %v58_v6 = vstv %s109_s5  ;;  %s187_s15 = smov [#allocation7]  }
  0x26   :  { %v60_v8 = vstv %s107_s6  ;;  %v61_v9 = vstv %s108_s7  ;;  %v59_v10 = vsel %vm229_vm0, %v57_v5, %v58_v6  ;;  %s97_s16 = sshll.u32 %s187_s15, 4  ;;  %s98_s16 = int_to_ptr.vmem [resolvable:$true] %s97_s16 }
  0x27   :  { %v62_v11 = vsel %vm229_vm0, %v60_v8, %v61_v9  ;;  %v66_v12 = vmul.f32 %v59_v10, %v35_v0  ;;  %v63_v14 = vstv %s110_s1  ;;  %v64_v15 = vstv %s111_s8  ;;  %s155_s17 = scalar_lea.vmem %s98_s16, 128  ;;  %p160_p12 = scmp.lt.s32.totalorder %s98_s16, %s98_s16 }
  0x28   :  { %v65_v18 = vsel %vm229_vm0, %v63_v14, %v64_v15  ;;  %v76_v25 = vstv %s112_s9  ;;  %v77_v26 = vstv %s115_s10  ;;  %p156_p11 = scmp.ne.s32.totalorder %s98_s16, %s155_s17  ;;  %p161_p13 = scmp.lt.s32.totalorder %s155_s17, %s155_s17 }
  0x29   :  { %v79_v23 = vstv %s113_s11  ;;  %v80_v24 = vstv %s114_s12  ;;  %v78_v28 = vsel %vm229_vm0, %v76_v25, %v77_v26 }
  0x2a   :  { %v81_v27 = vsel %vm229_vm0, %v79_v23, %v80_v24  ;;  %v82_v30 = vstv %s116_s13  ;;  %v83_v31 = vstv %s117_s14  ;;  %p162_p0 = por %p161_p13, %p160_p12 }
  0x2b   :  { %v84_v35 = vsel %vm229_vm0, %v82_v30, %v83_v31 }
  0x2c   :  { %p163_p1 = pnand %p162_p0, %p156_p11 }
  0x91   :  { %v41_v7 = vpop.permute.xlu0 %40 }
  0x95   :  { %v43_v13 = vpop.permute.xlu0 %42 }
  0x96   :  { %v44_v16 = vsel %vm229_vm0, %v41_v7, %v43_v13 }
  0x97   :  { %v67_v17 = vmul.f32 %v62_v11, %v44_v16 }
  0x99   :  { %v68_v19 = vadd.f32 %v67_v17, %v66_v12 }
  0x9b   :  { %v69_v20 = vadd.f32 %v68_v19, %v65_v18 }
  0x9d   :  { %v70_v21 = vmax.f32 %v69_v20, 0.0 }
  0x9f   :  { %71 = vrot.lane.b32.xlu1 %v70_v21, %s185_s30  ;;  %v85_v34 = vmul.f32 %v78_v28, %v70_v21 }
  0xa3   :  { %73 = vrot.lane.b32.xlu1 %v70_v21, %s186_s3 }
 0x111   :  { %v72_v22 = vpop.permute.xlu1 %71 }
 0x115   :  { %v74_v29 = vpop.permute.xlu1 %73 }
 0x116   :  { %v75_v32 = vsel %vm229_vm0, %v72_v22, %v74_v29 }
 0x117   :  { %v86_v33 = vmul.f32 %v81_v27, %v75_v32 }
 0x119   :  { %v87_v36 = vadd.f32 %v86_v33, %v85_v34 }
 0x11b   :  { %v88_v37 = vadd.f32 %v87_v36, %v84_v35 }
 0x11d   :  { %v89_v38 = vmax.f32 %v88_v37, 0.0 }
 0x11f   :  { %90 = vst [vmem:[#allocation7] sm:$0xff] %v89_v38 }
 0x120   :  { %166 = shalt.err (!%p163_p1)
}
 0x121   :  { %s167_s20 = scalar_lea.hbm %s265_s2, 128 }
 0x122   :  { %p168_p2 = scmp.ne.s32.totalorder %s265_s2, %s167_s20  ;;  %p171_p3 = scmp.lt.u32.totalorder %s167_s20, %s265_s2 }
 0x124   :  { %p173_p4 = pnand %p171_p3, %p168_p2 }
 0x126   :  { %176 = shalt.err (!%p173_p4)
}
 0x127   :  { %100 = dma.vmem_to_hbm [thread:$0]  %s98_s16, 128, %s265_s2, [#allocation4]  }
 0x128   :  { %181 = dma.done.wait [#allocation4], 128  }
 0x129   :  { %182 = vsyncadd [#allocation4], 4294967168 }
 0x12a   :  { %104 = vsyncpa [#allocation3], 1 }
 0x12b   :  { %105 = vsyncpa [#allocation4], 1 }
 0x12c   :  { %106 = vsyncpa [#allocation5], 1 }

</bundles_post_ra>
